<compile_context>
chip_gen: v5e
topology: v5e:2x2
jax: 0.10.0
libtpu: 0.0.40
codegen_flags: <defaults>
</compile_context>

<pallas_src>
import functools

import numpy as np
import jax
import jax.numpy as jnp
from jax.experimental import pallas as pl
from jax.experimental.pallas import tpu as pltpu

S = 7          # grid size
B_BOX = 2      # boxes per cell
C = 5          # number of classes
LAMBDA_COORD = 5.0
LAMBDA_NOOBJ = 1.0
INV_S = 1.0 / S

# preds channel rows (after transpose):
#   0..4  : class logits
#   5     : box-1 conf,  6..9  : box-1 (x, y, w, h)
#   10    : box-2 conf,  11..14: box-2 (x, y, w, h)
# targets channel rows:
#   0: class, 1: obj flag, 2..5: (x, y, w, h), 6: grid_x/S, 7: grid_y/S


def yolo_loss_kernel(preds_ref, tgt_ref, out_ref, acc_ref, *, inv_b):
    step = pl.program_id(0)
    f32 = jnp.float32

    @pl.when(step == 0)
    def _init():
        acc_ref[...] = jnp.zeros_like(acc_ref)

    def pld(c):
        return preds_ref[c].astype(f32)       # (TM, 128) dense tile

    def tld(c):
        return tgt_ref[c].astype(f32)

    # ---- targets --------------------------------------------------------
    t_cls = tld(0).astype(jnp.int32)
    t_flag = tld(1)
    t_obj = (t_flag == 1.0).astype(f32)
    t_noobj = (t_flag == 0.0).astype(f32)
    tx, ty, tw, th = tld(2), tld(3), tld(4), tld(5)
    gxs, gys = tld(6), tld(7)                  # grid_x/S, grid_y/S (precomputed)

    # target corners computed once, reused for both predicted boxes
    txc = tx * INV_S + gxs
    tyc = ty * INV_S + gys
    tx1 = txc - tw * 0.5
    ty1 = tyc - th * 0.5
    tx2 = txc + tw * 0.5
    ty2 = tyc + th * 0.5
    t_area = jnp.abs(tw * th)

    def calc_iou(px, py, pw, ph):
        pxc = px * INV_S + gxs
        pyc = py * INV_S + gys
        phw = pw * 0.5
        phh = ph * 0.5
        x1 = jnp.maximum(pxc - phw, tx1)
        y1 = jnp.maximum(pyc - phh, ty1)
        x2 = jnp.minimum(pxc + phw, tx2)
        y2 = jnp.minimum(pyc + phh, ty2)
        inter = jnp.maximum(x2 - x1, 0.0) * jnp.maximum(y2 - y1, 0.0)
        union = jnp.abs(pw * ph) + t_area - inter
        pos = inter > 0.0
        # guard the denominator so the unselected branch never produces NaN
        return jnp.where(pos, inter / jnp.where(pos, union, 1.0), inter)

    # ---- predictions -----------------------------------------------------
    b1c, b1x, b1y, b1w, b1h = pld(C), pld(C + 1), pld(C + 2), pld(C + 3), pld(C + 4)
    b2c, b2x, b2y, b2w, b2h = pld(C + 5), pld(C + 6), pld(C + 7), pld(C + 8), pld(C + 9)

    iou1 = calc_iou(b1x, b1y, b1w, b1h)
    iou2 = calc_iou(b2x, b2y, b2w, b2h)
    best = iou1 >= iou2
    best_iou = jnp.maximum(iou1, iou2)
    best_c = jnp.where(best, b1c, b2c)
    best_x = jnp.where(best, b1x, b2x)
    best_y = jnp.where(best, b1y, b2y)
    best_w = jnp.where(best, b1w, b2w)
    best_h = jnp.where(best, b1h, b2h)

    # ---- per-cell loss terms --------------------------------------------
    obj_term = (best_c - best_iou) ** 2 * t_obj
    noobj_term = (b1c * b1c + b2c * b2c) * t_noobj

    dx = best_x - tx
    dy = best_y - ty
    # TODO(synk): plain sqrt matches the PyTorch module; negative predicted w/h
    # would NaN here exactly as in the original (no sign(x)*sqrt(|x|) fix applied).
    dw = jnp.sqrt(best_w) - jnp.sqrt(tw)
    dh = jnp.sqrt(best_h) - jnp.sqrt(th)
    box_term = (dx * dx + dy * dy + dw * dw + dh * dh) * t_obj

    # cross-entropy over the C class channels (statically unrolled, C == 5)
    logits = [pld(c) for c in range(C)]
    mmax = logits[0]
    for c in range(1, C):
        mmax = jnp.maximum(mmax, logits[c])
    sexp = jnp.zeros_like(mmax)
    picked = jnp.zeros_like(mmax)
    for c in range(C):
        sexp = sexp + jnp.exp(logits[c] - mmax)
        picked = picked + jnp.where(t_cls == c, logits[c], 0.0)
    ce = jnp.log(sexp) + mmax - picked
    cls_term = ce * t_obj

    # ---- accumulate per-lane partial sums into resident VMEM accumulator --
    obj_l = jnp.sum(obj_term, axis=0, keepdims=True)      # (1, 128)
    noobj_l = jnp.sum(noobj_term, axis=0, keepdims=True)
    box_l = jnp.sum(box_term, axis=0, keepdims=True)
    cls_l = jnp.sum(cls_term, axis=0, keepdims=True)

    row = jax.lax.broadcasted_iota(jnp.int32, (8, 128), 0)

    def place(vec, r):
        return jnp.where(row == r, jnp.broadcast_to(vec, (8, 128)), 0.0)

    acc_ref[...] = acc_ref[...] + (place(obj_l, 0) + place(noobj_l, 1)
                                   + place(box_l, 2) + place(cls_l, 3))

    # ---- finalize: lane-reduce, scale by 1/batch, pack lane-dense output --
    @pl.when(step == pl.num_programs(0) - 1)
    def _finalize():
        acc = acc_ref[...]
        obj_s = jnp.sum(jnp.where(row == 0, acc, 0.0)) * inv_b
        noobj_s = jnp.sum(jnp.where(row == 1, acc, 0.0)) * inv_b
        box_s = jnp.sum(jnp.where(row == 2, acc, 0.0)) * inv_b
        cls_s = jnp.sum(jnp.where(row == 3, acc, 0.0)) * inv_b
        total = obj_s + LAMBDA_NOOBJ * noobj_s + LAMBDA_COORD * box_s + cls_s
        lane = jax.lax.broadcasted_iota(jnp.int32, (8, 128), 1)
        out_ref[...] = ((lane == 0).astype(f32) * total
                        + (lane == 1).astype(f32) * obj_s
                        + (lane == 2).astype(f32) * noobj_s
                        + (lane == 3).astype(f32) * box_s
                        + (lane == 4).astype(f32) * cls_s)


def yolo_loss(preds, targets, *, max_rows_per_step=64):
    """preds: (batch, S*S, C + B*5) f32/bf16; targets: (batch, S*S, 6) float.
    Returns [total, obj, noobj, box, cls] scalar jax arrays."""
    preds = jnp.asarray(preds)
    targets = jnp.asarray(targets)
    bsz, n, ch = preds.shape
    assert n == S * S and ch == C + B_BOX * 5
    assert targets.shape == (bsz, n, 6)

    flat = bsz * n
    m_raw = (flat + 127) // 128                      # lane-rows of 128 cells each
    cap = max(8, (max_rows_per_step // 8) * 8)       # multi-step tiles must be 8-aligned
    tm = m_raw if m_raw <= cap else cap
    n_steps = (m_raw + tm - 1) // tm
    m_pad = n_steps * tm
    lanes = m_pad * 128

    # channel-major, lane-dense relayout (layout plumbing outside the kernel)
    p = jnp.transpose(preds, (2, 0, 1)).reshape(ch, flat)
    t = jnp.transpose(targets.astype(jnp.float32), (2, 0, 1)).reshape(6, flat)

    # static per-cell grid offsets, pre-divided by S (torch.meshgrid 'ij' order:
    # grid_x[k] = k // S, grid_y[k] = k % S), tiled over the batch.
    cell = np.arange(n)
    gx = (cell // S).astype(np.float32) * INV_S
    gy = (cell % S).astype(np.float32) * INV_S
    grid_rows = np.stack([np.tile(gx, bsz), np.tile(gy, bsz)], axis=0)   # (2, flat)
    t = jnp.concatenate([t, jnp.asarray(grid_rows)], axis=0)             # (8, flat)

    p = jnp.pad(p, ((0, 0), (0, lanes - flat))).reshape(ch, m_pad, 128)
    t = jnp.pad(t, ((0, 0), (0, lanes - flat))).reshape(8, m_pad, 128)
    # (zero padding contributes exactly 0 to every loss term: obj mask is 0 and
    #  padded confidences are 0, so the noobj term is 0 as well.)

    kernel = functools.partial(yolo_loss_kernel, inv_b=1.0 / bsz)
    out = pl.pallas_call(
        kernel,
        out_shape=jax.ShapeDtypeStruct((8, 128), jnp.float32),
        grid_spec=pltpu.PrefetchScalarGridSpec(
            num_scalar_prefetch=0,
            grid=(n_steps,),
            in_specs=[pl.BlockSpec((ch, tm, 128), lambda i: (0, i, 0)),
                      pl.BlockSpec((8, tm, 128), lambda i: (0, i, 0))],
            out_specs=pl.BlockSpec((8, 128), lambda i: (0, 0)),
            scratch_shapes=[pltpu.VMEM((8, 128), jnp.float32)]),
        compiler_params=pltpu.CompilerParams(
            dimension_semantics=("arbitrary",),     # grid axis is a reduction
            vmem_limit_bytes=32 * 1024 * 1024),
    )(p, t)
    return [out[0, i] for i in range(5)]


# ----------------------------------------------------------------------------
# Host-side glue: target building (mirrors YoloLoss.build_target) and reference
# ----------------------------------------------------------------------------
def build_target(label):
    target = np.zeros((S, S, 6), dtype=np.float32)
    for box in label:
        x_cell, y_cell = int(box[1] * S), int(box[2] * S)
        if target[y_cell, x_cell, 1] == 0:
            target[y_cell, x_cell, 1] = 1
            target[y_cell, x_cell, 2:4] = [box[1] * S - x_cell, box[2] * S - y_cell]
            target[y_cell, x_cell, 4:] = box[3:5]
            target[y_cell, x_cell, 0] = box[0]
        elif target[y_cell, x_cell, 4] * target[y_cell, x_cell, 5] < box[3] * box[4]:
            target[y_cell, x_cell, 2:4] = [box[1] * S - x_cell, box[2] * S - y_cell]
            target[y_cell, x_cell, 4:] = box[3:5]
            target[y_cell, x_cell, 0] = box[0]
    return target


def reference_loss(preds, targets):
    p = np.asarray(preds, np.float32)
    t = np.asarray(targets, np.float32)
    bsz, n, _ = p.shape
    idx = np.arange(n)
    gx = (idx // S).astype(np.float32)[None, :]
    gy = (idx % S).astype(np.float32)[None, :]

    def corners(b):
        xc = (b[..., 0] + gx) / S
        yc = (b[..., 1] + gy) / S
        return xc - b[..., 2] / 2, yc - b[..., 3] / 2, xc + b[..., 2] / 2, yc + b[..., 3] / 2

    def iou(pb, tb):
        px1, py1, px2, py2 = corners(pb)
        tx1, ty1, tx2, ty2 = corners(tb)
        x1 = np.maximum(px1, tx1); y1 = np.maximum(py1, ty1)
        x2 = np.minimum(px2, tx2); y2 = np.minimum(py2, ty2)
        inter = np.clip(x2 - x1, 0, None) * np.clip(y2 - y1, 0, None)
        union = np.abs(pb[..., 2] * pb[..., 3]) + np.abs(tb[..., 2] * tb[..., 3]) - inter
        return np.where(inter > 0, inter / np.where(inter > 0, union, 1.0), inter)

    pred_cls = p[..., :C]
    b1c, b1 = p[..., C], p[..., C + 1:C + 5]
    b2c, b2 = p[..., C + 5], p[..., C + 6:C + 10]
    tobj = (t[..., 1] == 1).astype(np.float32)
    tnoobj = (t[..., 1] == 0).astype(np.float32)
    tcls = t[..., 0].astype(np.int64)
    tbox = t[..., 2:6]

    i1, i2 = iou(b1, tbox), iou(b2, tbox)
    mask = i1 >= i2
    bb = np.where(mask[..., None], b1, b2)
    bc = np.where(mask, b1c, b2c)

    obj = ((bc - np.maximum(i1, i2)) ** 2 * tobj).sum() / bsz
    noobj = ((b1c ** 2 * tnoobj).sum() + (b2c ** 2 * tnoobj).sum()) / bsz
    bxy = ((bb[..., :2] - tbox[..., :2]) ** 2).sum(-1)
    bwh = ((np.sqrt(bb[..., 2:]) - np.sqrt(tbox[..., 2:])) ** 2).sum(-1)
    boxl = ((bxy + bwh) * tobj).sum() / bsz
    z = pred_cls - pred_cls.max(-1, keepdims=True)
    logp = z - np.log(np.exp(z).sum(-1, keepdims=True))
    ce = -np.take_along_axis(logp, tcls[..., None], axis=-1)[..., 0]
    clsl = (ce * tobj).sum() / bsz
    total = obj + LAMBDA_NOOBJ * noobj + LAMBDA_COORD * boxl + clsl
    return np.array([total, obj, noobj, boxl, clsl], dtype=np.float32)


def _make_inputs(batch, nbox, seed):
    key = jax.random.PRNGKey(seed)
    k1, k2, k3, k4 = jax.random.split(key, 4)
    preds = jax.random.uniform(k1, (batch, S * S, C + B_BOX * 5),
                               dtype=jnp.float32, minval=0.05, maxval=0.95)
    cls_ids = np.asarray(jax.random.randint(k2, (batch, 3), 0, C)).astype(np.float32)
    xy = np.asarray(jax.random.uniform(k3, (batch, nbox, 2), minval=0.05, maxval=0.95))
    wh = np.asarray(jax.random.uniform(k4, (batch, nbox, 2), minval=0.05, maxval=0.5))
    labels = np.concatenate([cls_ids[:, :nbox, None], xy, wh], axis=-1)
    targets_np = np.stack([build_target(labels[b]) for b in range(batch)], axis=0)
    targets = jnp.asarray(targets_np.reshape(batch, S * S, 6), dtype=jnp.float32)
    return preds, targets


if __name__ == "__main__":
    # Test 1: small batch, single grid step.
    preds, targets = _make_inputs(batch=2, nbox=3, seed=0)
    losses = yolo_loss(preds, targets)
    losses = [jax.block_until_ready(x) for x in losses]
    got = np.array([float(x) for x in losses], dtype=np.float32)
    ref = reference_loss(np.asarray(preds), np.asarray(targets))
    np.testing.assert_allclose(got, ref, rtol=1e-2, atol=1e-4)

    # Test 2: larger batch with a small tile cap to exercise the multi-step
    # grid accumulation (init / finalize) and lane padding paths.
    preds2, targets2 = _make_inputs(batch=24, nbox=3, seed=1)
    losses2 = yolo_loss(preds2, targets2, max_rows_per_step=8)
    losses2 = [jax.block_until_ready(x) for x in losses2]
    got2 = np.array([float(x) for x in losses2], dtype=np.float32)
    ref2 = reference_loss(np.asarray(preds2), np.asarray(targets2))
    np.testing.assert_allclose(got2, ref2, rtol=1e-2, atol=1e-4)

    print("KERNEL_OK")
</pallas_src>

<mosaic_0001>
module attributes {stable_mosaic.version = 11 : i64} {
  func.func @yolo_loss_kernel(%arg0: i32, %arg1: memref<15x1x128xf32, #tpu.memory_space<vmem>>, %arg2: memref<8x1x128xf32, #tpu.memory_space<vmem>>, %arg3: memref<8x128xf32, #tpu.memory_space<vmem>>, %arg4: memref<8x128xf32, #tpu.memory_space<vmem>>) attributes {dimension_semantics = [#tpu.dimension_semantics<arbitrary>], iteration_bounds = array<i64: 1>, scalar_prefetch = 0 : i64, scratch_operands = 1 : i64, tpu.core_type = #tpu.core_type<tc>, window_params = [{transform_indices = @transform_0, window_bounds = array<i64: 15, 1, 128>}, {transform_indices = @transform_1, window_bounds = array<i64: 8, 1, 128>}, {pipeline_mode = #tpu.pipeline_mode<synchronous>, transform_indices = @transform_2, window_bounds = array<i64: 8, 128>}]} {
    %c0_i32 = arith.constant 0 : i32
    %0 = arith.cmpi eq, %arg0, %c0_i32 : i32
    %1 = arith.extui %0 : i1 to i32
    %c0_i32_0 = arith.constant 0 : i32
    %2 = arith.cmpi ne, %1, %c0_i32_0 : i32
    scf.if %2 {
      %cst_104 = arith.constant 0.000000e+00 : f32
      %270 = vector.broadcast %cst_104 : f32 to vector<8x128xf32>
      %c0_105 = arith.constant 0 : index
      %c0_106 = arith.constant 0 : index
      %271 = vector.load %arg4[%c0_105, %c0_106] : memref<8x128xf32, #tpu.memory_space<vmem>>, vector<8x128xf32>
      tpu.vector_store %arg4[%c0_105, %c0_106], %270 {strides = array<i32>} : memref<8x128xf32, #tpu.memory_space<vmem>>, vector<8x128xf32>,
    } else {
    }
    %c0 = arith.constant 0 : index
    %c0_1 = arith.constant 0 : index
    %c0_2 = arith.constant 0 : index
    %3 = vector.load %arg2[%c0, %c0_1, %c0_2] : memref<8x1x128xf32, #tpu.memory_space<vmem>>, vector<1x1x128xf32>
    %4 = vector.shape_cast %3 : vector<1x1x128xf32> to vector<1x128xf32>
    %5 = arith.fptosi %4 : vector<1x128xf32> to vector<1x128xi32>
    %c1 = arith.constant 1 : index
    %c0_3 = arith.constant 0 : index
    %c0_4 = arith.constant 0 : index
    %6 = vector.load %arg2[%c1, %c0_3, %c0_4] : memref<8x1x128xf32, #tpu.memory_space<vmem>>, vector<1x1x128xf32>
    %7 = vector.shape_cast %6 : vector<1x1x128xf32> to vector<1x128xf32>
    %cst = arith.constant 1.000000e+00 : f32
    %8 = vector.broadcast %cst : f32 to vector<1x128xf32>
    %9 = arith.cmpf oeq, %7, %8 : vector<1x128xf32>
    %10 = arith.extui %9 : vector<1x128xi1> to vector<1x128xi32>
    %11 = arith.sitofp %10 : vector<1x128xi32> to vector<1x128xf32>
    %cst_5 = arith.constant 0.000000e+00 : f32
    %12 = vector.broadcast %cst_5 : f32 to vector<1x128xf32>
    %13 = arith.cmpf oeq, %7, %12 : vector<1x128xf32>
    %14 = arith.extui %13 : vector<1x128xi1> to vector<1x128xi32>
    %15 = arith.sitofp %14 : vector<1x128xi32> to vector<1x128xf32>
    %c2 = arith.constant 2 : index
    %c0_6 = arith.constant 0 : index
    %c0_7 = arith.constant 0 : index
    %16 = vector.load %arg2[%c2, %c0_6, %c0_7] : memref<8x1x128xf32, #tpu.memory_space<vmem>>, vector<1x1x128xf32>
    %17 = vector.shape_cast %16 : vector<1x1x128xf32> to vector<1x128xf32>
    %c3 = arith.constant 3 : index
    %c0_8 = arith.constant 0 : index
    %c0_9 = arith.constant 0 : index
    %18 = vector.load %arg2[%c3, %c0_8, %c0_9] : memref<8x1x128xf32, #tpu.memory_space<vmem>>, vector<1x1x128xf32>
    %19 = vector.shape_cast %18 : vector<1x1x128xf32> to vector<1x128xf32>
    %c4 = arith.constant 4 : index
    %c0_10 = arith.constant 0 : index
    %c0_11 = arith.constant 0 : index
    %20 = vector.load %arg2[%c4, %c0_10, %c0_11] : memref<8x1x128xf32, #tpu.memory_space<vmem>>, vector<1x1x128xf32>
    %21 = vector.shape_cast %20 : vector<1x1x128xf32> to vector<1x128xf32>
    %c5 = arith.constant 5 : index
    %c0_12 = arith.constant 0 : index
    %c0_13 = arith.constant 0 : index
    %22 = vector.load %arg2[%c5, %c0_12, %c0_13] : memref<8x1x128xf32, #tpu.memory_space<vmem>>, vector<1x1x128xf32>
    %23 = vector.shape_cast %22 : vector<1x1x128xf32> to vector<1x128xf32>
    %c6 = arith.constant 6 : index
    %c0_14 = arith.constant 0 : index
    %c0_15 = arith.constant 0 : index
    %24 = vector.load %arg2[%c6, %c0_14, %c0_15] : memref<8x1x128xf32, #tpu.memory_space<vmem>>, vector<1x1x128xf32>
    %25 = vector.shape_cast %24 : vector<1x1x128xf32> to vector<1x128xf32>
    %c7 = arith.constant 7 : index
    %c0_16 = arith.constant 0 : index
    %c0_17 = arith.constant 0 : index
    %26 = vector.load %arg2[%c7, %c0_16, %c0_17] : memref<8x1x128xf32, #tpu.memory_space<vmem>>, vector<1x1x128xf32>
    %27 = vector.shape_cast %26 : vector<1x1x128xf32> to vector<1x128xf32>
    %cst_18 = arith.constant 0.142857149 : f32
    %28 = vector.broadcast %cst_18 : f32 to vector<1x128xf32>
    %29 = arith.mulf %17, %28 : vector<1x128xf32>
    %30 = arith.addf %29, %25 : vector<1x128xf32>
    %cst_19 = arith.constant 0.142857149 : f32
    %31 = vector.broadcast %cst_19 : f32 to vector<1x128xf32>
    %32 = arith.mulf %19, %31 : vector<1x128xf32>
    %33 = arith.addf %32, %27 : vector<1x128xf32>
    %cst_20 = arith.constant 5.000000e-01 : f32
    %34 = vector.broadcast %cst_20 : f32 to vector<1x128xf32>
    %35 = arith.mulf %21, %34 : vector<1x128xf32>
    %36 = arith.subf %30, %35 : vector<1x128xf32>
    %cst_21 = arith.constant 5.000000e-01 : f32
    %37 = vector.broadcast %cst_21 : f32 to vector<1x128xf32>
    %38 = arith.mulf %23, %37 : vector<1x128xf32>
    %39 = arith.subf %33, %38 : vector<1x128xf32>
    %cst_22 = arith.constant 5.000000e-01 : f32
    %40 = vector.broadcast %cst_22 : f32 to vector<1x128xf32>
    %41 = arith.mulf %21, %40 : vector<1x128xf32>
    %42 = arith.addf %30, %41 : vector<1x128xf32>
    %cst_23 = arith.constant 5.000000e-01 : f32
    %43 = vector.broadcast %cst_23 : f32 to vector<1x128xf32>
    %44 = arith.mulf %23, %43 : vector<1x128xf32>
    %45 = arith.addf %33, %44 : vector<1x128xf32>
    %46 = arith.mulf %21, %23 : vector<1x128xf32>
    %47 = math.absf %46 : vector<1x128xf32>
    %c5_24 = arith.constant 5 : index
    %c0_25 = arith.constant 0 : index
    %c0_26 = arith.constant 0 : index
    %48 = vector.load %arg1[%c5_24, %c0_25, %c0_26] : memref<15x1x128xf32, #tpu.memory_space<vmem>>, vector<1x1x128xf32>
    %49 = vector.shape_cast %48 : vector<1x1x128xf32> to vector<1x128xf32>
    %c6_27 = arith.constant 6 : index
    %c0_28 = arith.constant 0 : index
    %c0_29 = arith.constant 0 : index
    %50 = vector.load %arg1[%c6_27, %c0_28, %c0_29] : memref<15x1x128xf32, #tpu.memory_space<vmem>>, vector<1x1x128xf32>
    %51 = vector.shape_cast %50 : vector<1x1x128xf32> to vector<1x128xf32>
    %c7_30 = arith.constant 7 : index
    %c0_31 = arith.constant 0 : index
    %c0_32 = arith.constant 0 : index
    %52 = vector.load %arg1[%c7_30, %c0_31, %c0_32] : memref<15x1x128xf32, #tpu.memory_space<vmem>>, vector<1x1x128xf32>
    %53 = vector.shape_cast %52 : vector<1x1x128xf32> to vector<1x128xf32>
    %c8 = arith.constant 8 : index
    %c0_33 = arith.constant 0 : index
    %c0_34 = arith.constant 0 : index
    %54 = vector.load %arg1[%c8, %c0_33, %c0_34] : memref<15x1x128xf32, #tpu.memory_space<vmem>>, vector<1x1x128xf32>
    %55 = vector.shape_cast %54 : vector<1x1x128xf32> to vector<1x128xf32>
    %c9 = arith.constant 9 : index
    %c0_35 = arith.constant 0 : index
    %c0_36 = arith.constant 0 : index
    %56 = vector.load %arg1[%c9, %c0_35, %c0_36] : memref<15x1x128xf32, #tpu.memory_space<vmem>>, vector<1x1x128xf32>
    %57 = vector.shape_cast %56 : vector<1x1x128xf32> to vector<1x128xf32>
    %c10 = arith.constant 10 : index
    %c0_37 = arith.constant 0 : index
    %c0_38 = arith.constant 0 : index
    %58 = vector.load %arg1[%c10, %c0_37, %c0_38] : memref<15x1x128xf32, #tpu.memory_space<vmem>>, vector<1x1x128xf32>
    %59 = vector.shape_cast %58 : vector<1x1x128xf32> to vector<1x128xf32>
    %c11 = arith.constant 11 : index
    %c0_39 = arith.constant 0 : index
    %c0_40 = arith.constant 0 : index
    %60 = vector.load %arg1[%c11, %c0_39, %c0_40] : memref<15x1x128xf32, #tpu.memory_space<vmem>>, vector<1x1x128xf32>
    %61 = vector.shape_cast %60 : vector<1x1x128xf32> to vector<1x128xf32>
    %c12 = arith.constant 12 : index
    %c0_41 = arith.constant 0 : index
    %c0_42 = arith.constant 0 : index
    %62 = vector.load %arg1[%c12, %c0_41, %c0_42] : memref<15x1x128xf32, #tpu.memory_space<vmem>>, vector<1x1x128xf32>
    %63 = vector.shape_cast %62 : vector<1x1x128xf32> to vector<1x128xf32>
    %c13 = arith.constant 13 : index
    %c0_43 = arith.constant 0 : index
    %c0_44 = arith.constant 0 : index
    %64 = vector.load %arg1[%c13, %c0_43, %c0_44] : memref<15x1x128xf32, #tpu.memory_space<vmem>>, vector<1x1x128xf32>
    %65 = vector.shape_cast %64 : vector<1x1x128xf32> to vector<1x128xf32>
    %c14 = arith.constant 14 : index
    %c0_45 = arith.constant 0 : index
    %c0_46 = arith.constant 0 : index
    %66 = vector.load %arg1[%c14, %c0_45, %c0_46] : memref<15x1x128xf32, #tpu.memory_space<vmem>>, vector<1x1x128xf32>
    %67 = vector.shape_cast %66 : vector<1x1x128xf32> to vector<1x128xf32>
    %cst_47 = arith.constant 0.142857149 : f32
    %68 = vector.broadcast %cst_47 : f32 to vector<1x128xf32>
    %69 = arith.mulf %51, %68 : vector<1x128xf32>
    %70 = arith.addf %69, %25 : vector<1x128xf32>
    %cst_48 = arith.constant 0.142857149 : f32
    %71 = vector.broadcast %cst_48 : f32 to vector<1x128xf32>
    %72 = arith.mulf %53, %71 : vector<1x128xf32>
    %73 = arith.addf %72, %27 : vector<1x128xf32>
    %cst_49 = arith.constant 5.000000e-01 : f32
    %74 = vector.broadcast %cst_49 : f32 to vector<1x128xf32>
    %75 = arith.mulf %55, %74 : vector<1x128xf32>
    %cst_50 = arith.constant 5.000000e-01 : f32
    %76 = vector.broadcast %cst_50 : f32 to vector<1x128xf32>
    %77 = arith.mulf %57, %76 : vector<1x128xf32>
    %78 = arith.subf %70, %75 : vector<1x128xf32>
    %79 = arith.maximumf %78, %36 : vector<1x128xf32>
    %80 = arith.subf %73, %77 : vector<1x128xf32>
    %81 = arith.maximumf %80, %39 : vector<1x128xf32>
    %82 = arith.addf %70, %75 : vector<1x128xf32>
    %83 = arith.minimumf %82, %42 : vector<1x128xf32>
    %84 = arith.addf %73, %77 : vector<1x128xf32>
    %85 = arith.minimumf %84, %45 : vector<1x128xf32>
    %86 = arith.subf %83, %79 : vector<1x128xf32>
    %cst_51 = arith.constant 0.000000e+00 : f32
    %87 = vector.broadcast %cst_51 : f32 to vector<1x128xf32>
    %88 = arith.maximumf %86, %87 : vector<1x128xf32>
    %89 = arith.subf %85, %81 : vector<1x128xf32>
    %cst_52 = arith.constant 0.000000e+00 : f32
    %90 = vector.broadcast %cst_52 : f32 to vector<1x128xf32>
    %91 = arith.maximumf %89, %90 : vector<1x128xf32>
    %92 = arith.mulf %88, %91 : vector<1x128xf32>
    %93 = arith.mulf %55, %57 : vector<1x128xf32>
    %94 = math.absf %93 : vector<1x128xf32>
    %95 = arith.addf %94, %47 : vector<1x128xf32>
    %96 = arith.subf %95, %92 : vector<1x128xf32>
    %cst_53 = arith.constant 0.000000e+00 : f32
    %97 = vector.broadcast %cst_53 : f32 to vector<1x128xf32>
    %98 = arith.cmpf ogt, %92, %97 : vector<1x128xf32>
    %cst_54 = arith.constant 1.000000e+00 : f32
    %99 = vector.broadcast %cst_54 : f32 to vector<1x128xf32>
    %100 = arith.select %98, %96, %99 : vector<1x128xi1>, vector<1x128xf32>
    %101 = arith.divf %92, %100 : vector<1x128xf32>
    %102 = arith.select %98, %101, %92 : vector<1x128xi1>, vector<1x128xf32>
    %cst_55 = arith.constant 0.142857149 : f32
    %103 = vector.broadcast %cst_55 : f32 to vector<1x128xf32>
    %104 = arith.mulf %61, %103 : vector<1x128xf32>
    %105 = arith.addf %104, %25 : vector<1x128xf32>
    %cst_56 = arith.constant 0.142857149 : f32
    %106 = vector.broadcast %cst_56 : f32 to vector<1x128xf32>
    %107 = arith.mulf %63, %106 : vector<1x128xf32>
    %108 = arith.addf %107, %27 : vector<1x128xf32>
    %cst_57 = arith.constant 5.000000e-01 : f32
    %109 = vector.broadcast %cst_57 : f32 to vector<1x128xf32>
    %110 = arith.mulf %65, %109 : vector<1x128xf32>
    %cst_58 = arith.constant 5.000000e-01 : f32
    %111 = vector.broadcast %cst_58 : f32 to vector<1x128xf32>
    %112 = arith.mulf %67, %111 : vector<1x128xf32>
    %113 = arith.subf %105, %110 : vector<1x128xf32>
    %114 = arith.maximumf %113, %36 : vector<1x128xf32>
    %115 = arith.subf %108, %112 : vector<1x128xf32>
    %116 = arith.maximumf %115, %39 : vector<1x128xf32>
    %117 = arith.addf %105, %110 : vector<1x128xf32>
    %118 = arith.minimumf %117, %42 : vector<1x128xf32>
    %119 = arith.addf %108, %112 : vector<1x128xf32>
    %120 = arith.minimumf %119, %45 : vector<1x128xf32>
    %121 = arith.subf %118, %114 : vector<1x128xf32>
    %cst_59 = arith.constant 0.000000e+00 : f32
    %122 = vector.broadcast %cst_59 : f32 to vector<1x128xf32>
    %123 = arith.maximumf %121, %122 : vector<1x128xf32>
    %124 = arith.subf %120, %116 : vector<1x128xf32>
    %cst_60 = arith.constant 0.000000e+00 : f32
    %125 = vector.broadcast %cst_60 : f32 to vector<1x128xf32>
    %126 = arith.maximumf %124, %125 : vector<1x128xf32>
    %127 = arith.mulf %123, %126 : vector<1x128xf32>
    %128 = arith.mulf %65, %67 : vector<1x128xf32>
    %129 = math.absf %128 : vector<1x128xf32>
    %130 = arith.addf %129, %47 : vector<1x128xf32>
    %131 = arith.subf %130, %127 : vector<1x128xf32>
    %cst_61 = arith.constant 0.000000e+00 : f32
    %132 = vector.broadcast %cst_61 : f32 to vector<1x128xf32>
    %133 = arith.cmpf ogt, %127, %132 : vector<1x128xf32>
    %cst_62 = arith.constant 1.000000e+00 : f32
    %134 = vector.broadcast %cst_62 : f32 to vector<1x128xf32>
    %135 = arith.select %133, %131, %134 : vector<1x128xi1>, vector<1x128xf32>
    %136 = arith.divf %127, %135 : vector<1x128xf32>
    %137 = arith.select %133, %136, %127 : vector<1x128xi1>, vector<1x128xf32>
    %138 = arith.cmpf oge, %102, %137 : vector<1x128xf32>
    %139 = arith.maximumf %102, %137 : vector<1x128xf32>
    %140 = arith.select %138, %49, %59 : vector<1x128xi1>, vector<1x128xf32>
    %141 = arith.select %138, %51, %61 : vector<1x128xi1>, vector<1x128xf32>
    %142 = arith.select %138, %53, %63 : vector<1x128xi1>, vector<1x128xf32>
    %143 = arith.select %138, %55, %65 : vector<1x128xi1>, vector<1x128xf32>
    %144 = arith.select %138, %57, %67 : vector<1x128xi1>, vector<1x128xf32>
    %145 = arith.subf %140, %139 : vector<1x128xf32>
    %146 = arith.mulf %145, %145 : vector<1x128xf32>
    %147 = arith.mulf %146, %11 : vector<1x128xf32>
    %148 = arith.mulf %49, %49 : vector<1x128xf32>
    %149 = arith.mulf %59, %59 : vector<1x128xf32>
    %150 = arith.addf %148, %149 : vector<1x128xf32>
    %151 = arith.mulf %150, %15 : vector<1x128xf32>
    %152 = arith.subf %141, %17 : vector<1x128xf32>
    %153 = arith.subf %142, %19 : vector<1x128xf32>
    %154 = math.sqrt %143 : vector<1x128xf32>
    %155 = math.sqrt %21 : vector<1x128xf32>
    %156 = arith.subf %154, %155 : vector<1x128xf32>
    %157 = math.sqrt %144 : vector<1x128xf32>
    %158 = math.sqrt %23 : vector<1x128xf32>
    %159 = arith.subf %157, %158 : vector<1x128xf32>
    %160 = arith.mulf %152, %152 : vector<1x128xf32>
    %161 = arith.mulf %153, %153 : vector<1x128xf32>
    %162 = arith.addf %160, %161 : vector<1x128xf32>
    %163 = arith.mulf %156, %156 : vector<1x128xf32>
    %164 = arith.addf %162, %163 : vector<1x128xf32>
    %165 = arith.mulf %159, %159 : vector<1x128xf32>
    %166 = arith.addf %164, %165 : vector<1x128xf32>
    %167 = arith.mulf %166, %11 : vector<1x128xf32>
    %c0_63 = arith.constant 0 : index
    %c0_64 = arith.constant 0 : index
    %c0_65 = arith.constant 0 : index
    %168 = vector.load %arg1[%c0_63, %c0_64, %c0_65] : memref<15x1x128xf32, #tpu.memory_space<vmem>>, vector<1x1x128xf32>
    %169 = vector.shape_cast %168 : vector<1x1x128xf32> to vector<1x128xf32>
    %c1_66 = arith.constant 1 : index
    %c0_67 = arith.constant 0 : index
    %c0_68 = arith.constant 0 : index
    %170 = vector.load %arg1[%c1_66, %c0_67, %c0_68] : memref<15x1x128xf32, #tpu.memory_space<vmem>>, vector<1x1x128xf32>
    %171 = vector.shape_cast %170 : vector<1x1x128xf32> to vector<1x128xf32>
    %c2_69 = arith.constant 2 : index
    %c0_70 = arith.constant 0 : index
    %c0_71 = arith.constant 0 : index
    %172 = vector.load %arg1[%c2_69, %c0_70, %c0_71] : memref<15x1x128xf32, #tpu.memory_space<vmem>>, vector<1x1x128xf32>
    %173 = vector.shape_cast %172 : vector<1x1x128xf32> to vector<1x128xf32>
    %c3_72 = arith.constant 3 : index
    %c0_73 = arith.constant 0 : index
    %c0_74 = arith.constant 0 : index
    %174 = vector.load %arg1[%c3_72, %c0_73, %c0_74] : memref<15x1x128xf32, #tpu.memory_space<vmem>>, vector<1x1x128xf32>
    %175 = vector.shape_cast %174 : vector<1x1x128xf32> to vector<1x128xf32>
    %c4_75 = arith.constant 4 : index
    %c0_76 = arith.constant 0 : index
    %c0_77 = arith.constant 0 : index
    %176 = vector.load %arg1[%c4_75, %c0_76, %c0_77] : memref<15x1x128xf32, #tpu.memory_space<vmem>>, vector<1x1x128xf32>
    %177 = vector.shape_cast %176 : vector<1x1x128xf32> to vector<1x128xf32>
    %178 = arith.maximumf %169, %171 : vector<1x128xf32>
    %179 = arith.maximumf %178, %173 : vector<1x128xf32>
    %180 = arith.maximumf %179, %175 : vector<1x128xf32>
    %181 = arith.maximumf %180, %177 : vector<1x128xf32>
    %cst_78 = arith.constant 0.000000e+00 : f32
    %182 = vector.broadcast %cst_78 : f32 to vector<1x128xf32>
    %cst_79 = arith.constant 0.000000e+00 : f32
    %183 = vector.broadcast %cst_79 : f32 to vector<1x128xf32>
    %184 = arith.subf %169, %181 : vector<1x128xf32>
    %185 = math.exp %184 : vector<1x128xf32>
    %186 = arith.addf %182, %185 : vector<1x128xf32>
    %c0_i32_80 = arith.constant 0 : i32
    %187 = vector.broadcast %c0_i32_80 : i32 to vector<1x128xi32>
    %188 = arith.cmpi eq, %5, %187 : vector<1x128xi32>
    %cst_81 = arith.constant 0.000000e+00 : f32
    %189 = vector.broadcast %cst_81 : f32 to vector<1x128xf32>
    %190 = arith.select %188, %169, %189 : vector<1x128xi1>, vector<1x128xf32>
    %191 = arith.addf %183, %190 : vector<1x128xf32>
    %192 = arith.subf %171, %181 : vector<1x128xf32>
    %193 = math.exp %192 : vector<1x128xf32>
    %194 = arith.addf %186, %193 : vector<1x128xf32>
    %c1_i32 = arith.constant 1 : i32
    %195 = vector.broadcast %c1_i32 : i32 to vector<1x128xi32>
    %196 = arith.cmpi eq, %5, %195 : vector<1x128xi32>
    %cst_82 = arith.constant 0.000000e+00 : f32
    %197 = vector.broadcast %cst_82 : f32 to vector<1x128xf32>
    %198 = arith.select %196, %171, %197 : vector<1x128xi1>, vector<1x128xf32>
    %199 = arith.addf %191, %198 : vector<1x128xf32>
    %200 = arith.subf %173, %181 : vector<1x128xf32>
    %201 = math.exp %200 : vector<1x128xf32>
    %202 = arith.addf %194, %201 : vector<1x128xf32>
    %c2_i32 = arith.constant 2 : i32
    %203 = vector.broadcast %c2_i32 : i32 to vector<1x128xi32>
    %204 = arith.cmpi eq, %5, %203 : vector<1x128xi32>
    %cst_83 = arith.constant 0.000000e+00 : f32
    %205 = vector.broadcast %cst_83 : f32 to vector<1x128xf32>
    %206 = arith.select %204, %173, %205 : vector<1x128xi1>, vector<1x128xf32>
    %207 = arith.addf %199, %206 : vector<1x128xf32>
    %208 = arith.subf %175, %181 : vector<1x128xf32>
    %209 = math.exp %208 : vector<1x128xf32>
    %210 = arith.addf %202, %209 : vector<1x128xf32>
    %c3_i32 = arith.constant 3 : i32
    %211 = vector.broadcast %c3_i32 : i32 to vector<1x128xi32>
    %212 = arith.cmpi eq, %5, %211 : vector<1x128xi32>
    %cst_84 = arith.constant 0.000000e+00 : f32
    %213 = vector.broadcast %cst_84 : f32 to vector<1x128xf32>
    %214 = arith.select %212, %175, %213 : vector<1x128xi1>, vector<1x128xf32>
    %215 = arith.addf %207, %214 : vector<1x128xf32>
    %216 = arith.subf %177, %181 : vector<1x128xf32>
    %217 = math.exp %216 : vector<1x128xf32>
    %218 = arith.addf %210, %217 : vector<1x128xf32>
    %c4_i32 = arith.constant 4 : i32
    %219 = vector.broadcast %c4_i32 : i32 to vector<1x128xi32>
    %220 = arith.cmpi eq, %5, %219 : vector<1x128xi32>
    %cst_85 = arith.constant 0.000000e+00 : f32
    %221 = vector.broadcast %cst_85 : f32 to vector<1x128xf32>
    %222 = arith.select %220, %177, %221 : vector<1x128xi1>, vector<1x128xf32>
    %223 = arith.addf %215, %222 : vector<1x128xf32>
    %224 = math.log %218 : vector<1x128xf32>
    %225 = arith.addf %224, %181 : vector<1x128xf32>
    %226 = arith.subf %225, %223 : vector<1x128xf32>
    %227 = arith.mulf %226, %11 : vector<1x128xf32>
    %cst_86 = arith.constant dense<0.000000e+00> : vector<128xf32>
    %228 = vector.multi_reduction <add>, %147, %cst_86 [0] : vector<1x128xf32> to vector<128xf32>
    %229 = vector.shape_cast %228 : vector<128xf32> to vector<1x128xf32>
    %cst_87 = arith.constant dense<0.000000e+00> : vector<128xf32>
    %230 = vector.multi_reduction <add>, %151, %cst_87 [0] : vector<1x128xf32> to vector<128xf32>
    %231 = vector.shape_cast %230 : vector<128xf32> to vector<1x128xf32>
    %cst_88 = arith.constant dense<0.000000e+00> : vector<128xf32>
    %232 = vector.multi_reduction <add>, %167, %cst_88 [0] : vector<1x128xf32> to vector<128xf32>
    %233 = vector.shape_cast %232 : vector<128xf32> to vector<1x128xf32>
    %cst_89 = arith.constant dense<0.000000e+00> : vector<128xf32>
    %234 = vector.multi_reduction <add>, %227, %cst_89 [0] : vector<1x128xf32> to vector<128xf32>
    %235 = vector.shape_cast %234 : vector<128xf32> to vector<1x128xf32>
    %236 = tpu.iota {dimensions = array<i32: 0>} : vector<8x128xi32>
    %c0_90 = arith.constant 0 : index
    %c0_91 = arith.constant 0 : index
    %237 = vector.load %arg4[%c0_90, %c0_91] : memref<8x128xf32, #tpu.memory_space<vmem>>, vector<8x128xf32>
    %c0_i32_92 = arith.constant 0 : i32
    %238 = vector.broadcast %c0_i32_92 : i32 to vector<8x128xi32>
    %239 = arith.cmpi eq, %236, %238 : vector<8x128xi32>
    %240 = vector.shape_cast %229 : vector<1x128xf32> to vector<1x128xf32>
    %241 = vector.broadcast %240 : vector<1x128xf32> to vector<8x128xf32>
    %cst_93 = arith.constant 0.000000e+00 : f32
    %242 = vector.broadcast %cst_93 : f32 to vector<8x128xf32>
    %243 = arith.select %239, %241, %242 : vector<8x128xi1>, vector<8x128xf32>
    %c1_i32_94 = arith.constant 1 : i32
    %244 = vector.broadcast %c1_i32_94 : i32 to vector<8x128xi32>
    %245 = arith.cmpi eq, %236, %244 : vector<8x128xi32>
    %246 = vector.shape_cast %231 : vector<1x128xf32> to vector<1x128xf32>
    %247 = vector.broadcast %246 : vector<1x128xf32> to vector<8x128xf32>
    %cst_95 = arith.constant 0.000000e+00 : f32
    %248 = vector.broadcast %cst_95 : f32 to vector<8x128xf32>
    %249 = arith.select %245, %247, %248 : vector<8x128xi1>, vector<8x128xf32>
    %250 = arith.addf %243, %249 : vector<8x128xf32>
    %c2_i32_96 = arith.constant 2 : i32
    %251 = vector.broadcast %c2_i32_96 : i32 to vector<8x128xi32>
    %252 = arith.cmpi eq, %236, %251 : vector<8x128xi32>
    %253 = vector.shape_cast %233 : vector<1x128xf32> to vector<1x128xf32>
    %254 = vector.broadcast %253 : vector<1x128xf32> to vector<8x128xf32>
    %cst_97 = arith.constant 0.000000e+00 : f32
    %255 = vector.broadcast %cst_97 : f32 to vector<8x128xf32>
    %256 = arith.select %252, %254, %255 : vector<8x128xi1>, vector<8x128xf32>
    %257 = arith.addf %250, %256 : vector<8x128xf32>
    %c3_i32_98 = arith.constant 3 : i32
    %258 = vector.broadcast %c3_i32_98 : i32 to vector<8x128xi32>
    %259 = arith.cmpi eq, %236, %258 : vector<8x128xi32>
    %260 = vector.shape_cast %235 : vector<1x128xf32> to vector<1x128xf32>
    %261 = vector.broadcast %260 : vector<1x128xf32> to vector<8x128xf32>
    %cst_99 = arith.constant 0.000000e+00 : f32
    %262 = vector.broadcast %cst_99 : f32 to vector<8x128xf32>
    %263 = arith.select %259, %261, %262 : vector<8x128xi1>, vector<8x128xf32>
    %264 = arith.addf %257, %263 : vector<8x128xf32>
    %265 = arith.addf %237, %264 : vector<8x128xf32>
    %c0_100 = arith.constant 0 : index
    %c0_101 = arith.constant 0 : index
    %266 = vector.load %arg4[%c0_100, %c0_101] : memref<8x128xf32, #tpu.memory_space<vmem>>, vector<8x128xf32>
    tpu.vector_store %arg4[%c0_100, %c0_101], %265 {strides = array<i32>} : memref<8x128xf32, #tpu.memory_space<vmem>>, vector<8x128xf32>,
    %c0_i32_102 = arith.constant 0 : i32
    %267 = arith.cmpi eq, %arg0, %c0_i32_102 : i32
    %268 = arith.extui %267 : i1 to i32
    %c0_i32_103 = arith.constant 0 : i32
    %269 = arith.cmpi ne, %268, %c0_i32_103 : i32
    scf.if %269 {
      %c0_104 = arith.constant 0 : index
      %c0_105 = arith.constant 0 : index
      %270 = vector.load %arg4[%c0_104, %c0_105] : memref<8x128xf32, #tpu.memory_space<vmem>>, vector<8x128xf32>
      %c0_i32_106 = arith.constant 0 : i32
      %271 = vector.broadcast %c0_i32_106 : i32 to vector<8x128xi32>
      %272 = arith.cmpi eq, %236, %271 : vector<8x128xi32>
      %cst_107 = arith.constant 0.000000e+00 : f32
      %273 = vector.broadcast %cst_107 : f32 to vector<8x128xf32>
      %274 = arith.select %272, %270, %273 : vector<8x128xi1>, vector<8x128xf32>
      %275 = vector.shape_cast %274 : vector<8x128xf32> to vector<1x8x128xf32>
      %cst_108 = arith.constant dense<0.000000e+00> : vector<1xf32>
      %276 = vector.multi_reduction <add>, %275, %cst_108 [1, 2] : vector<1x8x128xf32> to vector<1xf32>
      %277 = vector.shape_cast %276 : vector<1xf32> to vector<1x1x1xf32>
      %278 = vector.extract %277[0, 0, 0] : f32 from vector<1x1x1xf32>
      %cst_109 = arith.constant 5.000000e-01 : f32
      %279 = arith.mulf %278, %cst_109 : f32
      %c1_i32_110 = arith.constant 1 : i32
      %280 = vector.broadcast %c1_i32_110 : i32 to vector<8x128xi32>
      %281 = arith.cmpi eq, %236, %280 : vector<8x128xi32>
      %cst_111 = arith.constant 0.000000e+00 : f32
      %282 = vector.broadcast %cst_111 : f32 to vector<8x128xf32>
      %283 = arith.select %281, %270, %282 : vector<8x128xi1>, vector<8x128xf32>
      %284 = vector.shape_cast %283 : vector<8x128xf32> to vector<1x8x128xf32>
      %cst_112 = arith.constant dense<0.000000e+00> : vector<1xf32>
      %285 = vector.multi_reduction <add>, %284, %cst_112 [1, 2] : vector<1x8x128xf32> to vector<1xf32>
      %286 = vector.shape_cast %285 : vector<1xf32> to vector<1x1x1xf32>
      %287 = vector.extract %286[0, 0, 0] : f32 from vector<1x1x1xf32>
      %cst_113 = arith.constant 5.000000e-01 : f32
      %288 = arith.mulf %287, %cst_113 : f32
      %c2_i32_114 = arith.constant 2 : i32
      %289 = vector.broadcast %c2_i32_114 : i32 to vector<8x128xi32>
      %290 = arith.cmpi eq, %236, %289 : vector<8x128xi32>
      %cst_115 = arith.constant 0.000000e+00 : f32
      %291 = vector.broadcast %cst_115 : f32 to vector<8x128xf32>
      %292 = arith.select %290, %270, %291 : vector<8x128xi1>, vector<8x128xf32>
      %293 = vector.shape_cast %292 : vector<8x128xf32> to vector<1x8x128xf32>
      %cst_116 = arith.constant dense<0.000000e+00> : vector<1xf32>
      %294 = vector.multi_reduction <add>, %293, %cst_116 [1, 2] : vector<1x8x128xf32> to vector<1xf32>
      %295 = vector.shape_cast %294 : vector<1xf32> to vector<1x1x1xf32>
      %296 = vector.extract %295[0, 0, 0] : f32 from vector<1x1x1xf32>
      %cst_117 = arith.constant 5.000000e-01 : f32
      %297 = arith.mulf %296, %cst_117 : f32
      %c3_i32_118 = arith.constant 3 : i32
      %298 = vector.broadcast %c3_i32_118 : i32 to vector<8x128xi32>
      %299 = arith.cmpi eq, %236, %298 : vector<8x128xi32>
      %cst_119 = arith.constant 0.000000e+00 : f32
      %300 = vector.broadcast %cst_119 : f32 to vector<8x128xf32>
      %301 = arith.select %299, %270, %300 : vector<8x128xi1>, vector<8x128xf32>
      %302 = vector.shape_cast %301 : vector<8x128xf32> to vector<1x8x128xf32>
      %cst_120 = arith.constant dense<0.000000e+00> : vector<1xf32>
      %303 = vector.multi_reduction <add>, %302, %cst_120 [1, 2] : vector<1x8x128xf32> to vector<1xf32>
      %304 = vector.shape_cast %303 : vector<1xf32> to vector<1x1x1xf32>
      %305 = vector.extract %304[0, 0, 0] : f32 from vector<1x1x1xf32>
      %cst_121 = arith.constant 5.000000e-01 : f32
      %306 = arith.mulf %305, %cst_121 : f32
      %cst_122 = arith.constant 1.000000e+00 : f32
      %307 = arith.mulf %cst_122, %288 : f32
      %308 = arith.addf %279, %307 : f32
      %cst_123 = arith.constant 5.000000e+00 : f32
      %309 = arith.mulf %cst_123, %297 : f32
      %310 = arith.addf %308, %309 : f32
      %311 = arith.addf %310, %306 : f32
      %312 = tpu.iota {dimensions = array<i32: 1>} : vector<8x128xi32>
      %c0_i32_124 = arith.constant 0 : i32
      %313 = vector.broadcast %c0_i32_124 : i32 to vector<8x128xi32>
      %314 = arith.cmpi eq, %312, %313 : vector<8x128xi32>
      %315 = arith.extui %314 : vector<8x128xi1> to vector<8x128xi32>
      %316 = arith.sitofp %315 : vector<8x128xi32> to vector<8x128xf32>
      %317 = vector.broadcast %311 : f32 to vector<8x128xf32>
      %318 = arith.mulf %316, %317 : vector<8x128xf32>
      %c1_i32_125 = arith.constant 1 : i32
      %319 = vector.broadcast %c1_i32_125 : i32 to vector<8x128xi32>
      %320 = arith.cmpi eq, %312, %319 : vector<8x128xi32>
      %321 = arith.extui %320 : vector<8x128xi1> to vector<8x128xi32>
      %322 = arith.sitofp %321 : vector<8x128xi32> to vector<8x128xf32>
      %323 = vector.broadcast %279 : f32 to vector<8x128xf32>
      %324 = arith.mulf %322, %323 : vector<8x128xf32>
      %325 = arith.addf %318, %324 : vector<8x128xf32>
      %c2_i32_126 = arith.constant 2 : i32
      %326 = vector.broadcast %c2_i32_126 : i32 to vector<8x128xi32>
      %327 = arith.cmpi eq, %312, %326 : vector<8x128xi32>
      %328 = arith.extui %327 : vector<8x128xi1> to vector<8x128xi32>
      %329 = arith.sitofp %328 : vector<8x128xi32> to vector<8x128xf32>
      %330 = vector.broadcast %288 : f32 to vector<8x128xf32>
      %331 = arith.mulf %329, %330 : vector<8x128xf32>
      %332 = arith.addf %325, %331 : vector<8x128xf32>
      %c3_i32_127 = arith.constant 3 : i32
      %333 = vector.broadcast %c3_i32_127 : i32 to vector<8x128xi32>
      %334 = arith.cmpi eq, %312, %333 : vector<8x128xi32>
      %335 = arith.extui %334 : vector<8x128xi1> to vector<8x128xi32>
      %336 = arith.sitofp %335 : vector<8x128xi32> to vector<8x128xf32>
      %337 = vector.broadcast %297 : f32 to vector<8x128xf32>
      %338 = arith.mulf %336, %337 : vector<8x128xf32>
      %339 = arith.addf %332, %338 : vector<8x128xf32>
      %c4_i32_128 = arith.constant 4 : i32
      %340 = vector.broadcast %c4_i32_128 : i32 to vector<8x128xi32>
      %341 = arith.cmpi eq, %312, %340 : vector<8x128xi32>
      %342 = arith.extui %341 : vector<8x128xi1> to vector<8x128xi32>
      %343 = arith.sitofp %342 : vector<8x128xi32> to vector<8x128xf32>
      %344 = vector.broadcast %306 : f32 to vector<8x128xf32>
      %345 = arith.mulf %343, %344 : vector<8x128xf32>
      %346 = arith.addf %339, %345 : vector<8x128xf32>
      %c0_129 = arith.constant 0 : index
      %c0_130 = arith.constant 0 : index
      %347 = vector.load %arg3[%c0_129, %c0_130] : memref<8x128xf32, #tpu.memory_space<vmem>>, vector<8x128xf32>
      tpu.vector_store %arg3[%c0_129, %c0_130], %346 {strides = array<i32>} : memref<8x128xf32, #tpu.memory_space<vmem>>, vector<8x128xf32>,
    } else {
    }
    return
  }
  func.func @transform_0(%arg0: i32) -> (i32, i32, i32) {
    %c0_i32 = arith.constant 0 : i32
    %c0_i32_0 = arith.constant 0 : i32
    %c0_i32_1 = arith.constant 0 : i32
    return %c0_i32, %arg0, %c0_i32_0 : i32, i32, i32
  }
  func.func @transform_1(%arg0: i32) -> (i32, i32, i32) {
    %c0_i32 = arith.constant 0 : i32
    %c0_i32_0 = arith.constant 0 : i32
    %c0_i32_1 = arith.constant 0 : i32
    return %c0_i32, %arg0, %c0_i32_0 : i32, i32, i32
  }
  func.func @transform_2(%arg0: i32) -> (i32, i32) {
    %c0_i32 = arith.constant 0 : i32
    %c0_i32_0 = arith.constant 0 : i32
    %c0_i32_1 = arith.constant 0 : i32
    return %c0_i32, %c0_i32_0 : i32, i32
  }
}

</mosaic_0001>

<bundles_post_ra>
// kernel: tpu_custom_call.1
= control target key start
LH: loop header
LB: loop body
LE: loop exit
PB: predicated region body
PF: predicated region fallthrough
CT: control target
= control target key end

     0   :  { %7 = vsyncpa [#allocation4], 0  ;;  %s813_s0 = inlined_call_operand.hbm [shape: f32[15,1,128], index: 0, kind: input, shape index: {}]   ;;  %s814_s1 = inlined_call_operand.hbm [shape: f32[8,1,128], index: 1, kind: input, shape index: {}]   ;;  %s815_s2 = inlined_call_operand.hbm [shape: f32[8,128], index: 2, kind: output, shape index: {}]  }
   0x1   :  { %8 = vsyncpa [#allocation7], 0 }
   0x2   :  { %9 = vsyncpa [#allocation5], 0  ;;  %s14_s11 = sshll.u32 %s813_s0, 4  ;;  %s574_s12 = smov [#allocation3]   ;;  %s15_s11 = int_to_ptr.hbm [resolvable:$true] %s14_s11 }
   0x3   :  { %s16_s13 = sshll.u32 %s574_s12, 4  ;;  %s27_s16 = sshll.u32 %s814_s1, 4  ;;  %s17_s13 = int_to_ptr.vmem [resolvable:$true] %s16_s13  ;;  %s28_s16 = int_to_ptr.hbm [resolvable:$true] %s27_s16 }
   0x4   :  { %s575_s17 = smov 16   ;;  %s576_s18 = smov 1  }
   0x5   :  { %22 = dma.hbm_to_vmem [thread:$0]  %s15_s11, 240, %s17_s13, [#allocation4], %s575_s17, %s575_s17, %s576_s18  }
   0x6   :  { %s577_s19 = smov [#allocation6]  }
   0x7   :  { %s29_s20 = sshll.u32 %s577_s19, 4  ;;  %s30_s20 = int_to_ptr.vmem [resolvable:$true] %s29_s20 }
   0x8   :  { %35 = dma.hbm_to_vmem [thread:$0]  %s28_s16, 128, %s30_s20, [#allocation7], %s575_s17, %s575_s17, %s576_s18  }
   0x9   :  { %568 = dma.done.wait [#allocation4], 240  }
   0xa   :  { %569 = vsyncadd [#allocation4], 4294967056 }
   0xb   :  { %570 = dma.done.wait [#allocation7], 128  }
   0xc   :  { %571 = vsyncadd [#allocation7], 4294967168  ;;  %v601_v0 = vld [vmem:[#allocation6 + $0x2] sm:$0x1]  ;;  %v603_v1 = vld [vmem:[#allocation6 + $0x3] sm:$0x1] }
   0xd   :  { %v605_v2 = vld [vmem:[#allocation6 + $0x4] sm:$0x1]  ;;  %v607_v3 = vld [vmem:[#allocation6 + $0x5] sm:$0x1]  ;;  %v68_v4 = vld [vmem:[#allocation6 + $0x6] sm:$0x1] }
   0xe   :  { %v70_v5 = vld [vmem:[#allocation6 + $0x7] sm:$0x1]  ;;  %v71_v6 = vmul.f32 0.14285715, %v601_v0  ;;  %v75_v7 = vmul.f32 0.5, %v605_v2  ;;  %v77_v9 = vmul.f32 0.5, %v607_v3  ;;  %v81_v17 = vmul.f32 %v607_v3, %v605_v2 }
   0xf   :  { %v73_v8 = vmul.f32 0.14285715, %v603_v1  ;;  %v613_v11 = vld [vmem:[#allocation3 + $0x6] sm:$0x1]  ;;  %v615_v12 = vld [vmem:[#allocation3 + $0x7] sm:$0x1] }
  0x10   :  { %v72_v10 = vadd.f32 %v71_v6, %v68_v4  ;;  %v617_v14 = vld [vmem:[#allocation3 + $0x8] sm:$0x1]  ;;  %v619_v15 = vld [vmem:[#allocation3 + $0x9] sm:$0x1]  ;;  %v623_v18 = vld [vmem:[#allocation3 + $0xb] sm:$0x1] }
  0x11   :  { %v74_v13 = vadd.f32 %v73_v8, %v70_v5  ;;  %v625_v19 = vld [vmem:[#allocation3 + $0xc] sm:$0x1]  ;;  %v627_v20 = vld [vmem:[#allocation3 + $0xd] sm:$0x1]  ;;  %v122_v21 = vmul.f32 %v619_v15, %v617_v14  ;;  %v631_v24 = vld [vmem:[#allocation3 + $0xe] sm:$0x1] }
  0x12   :  { %v76_v16 = vsub.f32 %v72_v10, %v75_v7  ;;  %v79_v23 = vadd.f32 %v75_v7, %v72_v10  ;;  %v103_v25 = vmul.f32 0.14285715, %v613_v11  ;;  %v105_v26 = vmul.f32 0.14285715, %v615_v12  ;;  %v643_v47 = vld [vmem:[#allocation3] sm:$0x1] }
  0x13   :  { %v78_v22 = vsub.f32 %v74_v13, %v77_v9  ;;  %v80_v27 = vadd.f32 %v77_v9, %v74_v13  ;;  %v107_v28 = vmul.f32 0.5, %v617_v14  ;;  %v108_v29 = vmul.f32 0.5, %v619_v15  ;;  %v645_v48 = vld [vmem:[#allocation3 + $0x1] sm:$0x1]  ;;  %v647_v57 = vld [vmem:[#allocation3 + $0x2] sm:$0x1] }
  0x14   :  { %v144_v30 = vmul.f32 0.14285715, %v623_v18  ;;  %v104_v31 = vadd.f32 %v103_v25, %v68_v4  ;;  %v106_v32 = vadd.f32 %v105_v26, %v70_v5  ;;  %v146_v33 = vmul.f32 0.14285715, %v625_v19  ;;  %s579_s3 = smov [#allocation8]   ;;  %s435_s7 = sshll.u32 %s815_s2, 4  ;;  %s436_s7 = int_to_ptr.hbm [resolvable:$true] %s435_s7 }
  0x15   :  { %v148_v34 = vmul.f32 0.5, %v627_v20  ;;  %v82_v35 = vand.u32 2147483647, %v81_v17  ;;  %v123_v36 = vand.u32 2147483647, %v122_v21  ;;  %v149_v38 = vmul.f32 0.5, %v631_v24 }
  0x16   :  { %v145_v37 = vadd.f32 %v144_v30, %v68_v4  ;;  %v109_v39 = vsub.f32 %v104_v31, %v107_v28  ;;  %v111_v40 = vsub.f32 %v106_v32, %v108_v29  ;;  %v113_v41 = vadd.f32 %v107_v28, %v104_v31  ;;  %s433_s4 = sshll.u32 %s579_s3, 4  ;;  %s434_s4 = int_to_ptr.vmem [resolvable:$true] %s433_s4 }
  0x17   :  { %v115_v42 = vadd.f32 %v108_v29, %v106_v32  ;;  %v147_v43 = vadd.f32 %v146_v33, %v70_v5  ;;  %v163_v46 = vmul.f32 %v631_v24, %v627_v20  ;;  %v268_v60 = vmax.f32 %v643_v47, %v645_v48  ;;  %v651_v5 = vld [vmem:[#allocation3 + $0x3] sm:$0x1] }
  0x18   :  { %v150_v44 = vsub.f32 %v145_v37, %v148_v34  ;;  %v154_v45 = vadd.f32 %v148_v34, %v145_v37  ;;  %v110_v49 = vmax.f32 %v109_v39, %v76_v16  ;;  %v112_v50 = vmax.f32 %v111_v40, %v78_v22 }
  0x19   :  { %v114_v51 = vmin.f32 %v113_v41, %v79_v23  ;;  %v116_v52 = vmin.f32 %v115_v42, %v80_v27  ;;  %v152_v54 = vsub.f32 %v147_v43, %v149_v38  ;;  %v156_v56 = vadd.f32 %v149_v38, %v147_v43 }
  0x1a   :  { %v151_v53 = vmax.f32 %v150_v44, %v76_v16  ;;  %v155_v55 = vmin.f32 %v154_v45, %v79_v23  ;;  %v124_v61 = vadd.f32 %v123_v36, %v82_v35  ;;  %v164_v8 = vand.u32 2147483647, %v163_v46  ;;  %v654_v16 = vld [vmem:[#allocation3 + $0x4] sm:$0x1] }
  0x1b   :  { %v117_v58 = vsub.f32 %v114_v51, %v110_v49  ;;  %v119_v59 = vsub.f32 %v116_v52, %v112_v50  ;;  %v153_v62 = vmax.f32 %v152_v54, %v78_v22  ;;  %v157_v63 = vmin.f32 %v156_v56, %v80_v27  ;;  %v49_v51 = vld [vmem:[#allocation6] sm:$0x1] }
  0x1c   :  { %v158_v4 = vsub.f32 %v155_v55, %v151_v53  ;;  %v269_v9 = vmax.f32 %v268_v60, %v647_v57  ;;  %v165_v25 = vadd.f32 %v164_v8, %v82_v35  ;;  %vm453_vm8 = vcmp.lt.s32.totalorder %v49_v51, 0 }
  0x1d   :  { %v118_v6 = vmax.f32 %v117_v58, 0.0  ;;  %v120_v7 = vmax.f32 %v119_v59, 0.0  ;;  %v160_v13 = vsub.f32 %v157_v63, %v153_v62 }
  0x1e   :  { %v159_v10 = vmax.f32 %v158_v4, 0.0  ;;  %v270_v21 = vmax.f32 %v269_v9, %v651_v5  ;;  %v454_v4 = vceil.f32 %v49_v51 }
  0x1f   :  { %v656_v17 = vmul.f32 %v120_v7, %v118_v6  ;;  %v161_v23 = vmax.f32 %v160_v13, 0.0  ;;  %v455_v6 = vfloor.f32 %v49_v51 }
  0x20   :  { %v662_v26 = vmax.f32 %v270_v21, %v654_v16 }
  0x21   :  { %v125_v22 = vsub.f32 %v124_v61, %v656_v17  ;;  %vm126_vm0 = vcmp.gt.f32.partialorder %v656_v17, 0.0  ;;  %v664_v27 = vmul.f32 %v161_v23, %v159_v10 }
  0x22   :  { %v272_v29 = vsub.f32 %v643_v47, %v662_v26  ;;  %v279_v30 = vsub.f32 %v645_v48, %v662_v26  ;;  %v286_v34 = vsub.f32 %v647_v57, %v662_v26  ;;  %v293_v38 = vsub.f32 %v651_v5, %v662_v26 }
  0x23   :  { %v127_v28 = vsel %vm126_vm0, %v125_v22, 1.0  ;;  %v166_v31 = vsub.f32 %v165_v25, %v664_v27  ;;  %vm167_vm1 = vcmp.gt.f32.partialorder %v664_v27, 0.0  ;;  %v300_v49 = vsub.f32 %v654_v16, %v662_v26 }
  0x24   :  { %472 = vrcp.f32 %v127_v28  ;;  %v273_v32 = vmul.f32 1.442695, %v272_v29  ;;  %v280_v33 = vmul.f32 1.442695, %v279_v30  ;;  %v287_v37 = vmul.f32 1.442695, %v286_v34 }
  0x25   :  { %474 = vrsqrt.f32 %v605_v2  ;;  %v168_v35 = vsel %vm167_vm1, %v166_v31, 1.0  ;;  %v137_v40 = vand.u32 2147483647, %v127_v28  ;;  %v139_v42 = vand.u32 2147483648, %v127_v28 }
  0x26   :  { %476 = vrsqrt.f32 %v607_v3  ;;  %vm133_vm2 = vweird.f32 %v127_v28  ;;  %v294_v46 = vmul.f32 1.442695, %v293_v38  ;;  %vm174_vm6 = vweird.f32 %v168_v35 }
  0x27   :  { %478 = vrcp.f32 %v168_v35  ;;  %vm688_vm4 = vcmp.eq.f32.partialorder %v137_v40, 8.507059e+37  ;;  %v140_v58 = vor.u32 1.1754944e-38, %v139_v42  ;;  %v180_v59 = vand.u32 2147483648, %v168_v35 }
  0x28   :  { %480 = vpow2.f32 %v273_v32  ;;  %v178_v63 = vand.u32 2147483647, %v168_v35  ;;  %v301_v7 = vmul.f32 1.442695, %v300_v49  ;;  %v456_v30 = vsel %vm453_vm8, %v454_v4, %v455_v6  ;;  %v52_v49 = vld [vmem:[#allocation6 + $0x1] sm:$0x1] }
  0x29   :  { %482 = vpow2.f32 %v280_v33  ;;  %v181_v22 = vor.u32 1.1754944e-38, %v180_v59  ;;  %vm53_vm14 = vcmp.eq.f32.partialorder %v52_v49, 1.0  ;;  %vm56_vm15 = vcmp.eq.f32.partialorder %v52_v49, 0.0 }
  0x2a   :  { %v473_v36 = vpop.eup %472  ;;  %484 = vpow2.f32 %v287_v37  ;;  %vm179_vm10 = vcmp.eq.f32.partialorder %v178_v63, 8.507059e+37 }
  0x2b   :  { %v129_v39 = vmul.f32 %v473_v36, %v127_v28  ;;  %v682_v41 = vpop.eup %474  ;;  %vm134_vm3 = vweird.f32 %v473_v36  ;;  %486 = vpow2.f32 %v294_v46 }
  0x2c   :  { %v684_v43 = vpop.eup %476  ;;  %vm692_vm5 = vmor %vm133_vm2, %vm134_vm3  ;;  %v214_v60 = vmul.f32 %v682_v41, %v605_v2  ;;  %488 = vpow2.f32 %v301_v7  ;;  %vm222_vm2 = vcmp.eq.f32.partialorder %v605_v2, 0.0  ;;  %v223_v7 = vand.u32 2147483648, %v605_v2 }
  0x2d   :  { %v130_v44 = vsub.f32 1.0, %v129_v39  ;;  %v479_v45 = vpop.eup %478  ;;  %v239_v10 = vmul.f32 %v684_v43, %v607_v3  ;;  %v712_v39 = vcvt.f32.s32 %v456_v30 }
  0x2e   :  { %v481_v50 = vpop.eup %480  ;;  %v170_v54 = vmul.f32 %v479_v45, %v168_v35  ;;  %vm175_vm7 = vweird.f32 %v479_v45  ;;  %v215_v29 = vmul.f32 %v682_v41, %v214_v60 }
  0x2f   :  { %v131_v52 = vmul.f32 %v473_v36, %v130_v44  ;;  %v483_v55 = vpop.eup %482  ;;  %vm176_vm9 = vmor %vm174_vm6, %vm175_vm7  ;;  %v240_v32 = vmul.f32 %v684_v43, %v239_v10  ;;  %vm276_vm12 = vcmp.eq.s32.totalorder %v712_v39, 0  ;;  %vm283_vm13 = vcmp.eq.s32.totalorder %v712_v39, 1 }
  0x30   :  { %v171_v62 = vsub.f32 1.0, %v170_v54  ;;  %v282_v13 = vadd.f32 %v483_v55, %v481_v50  ;;  %v485_v21 = vpop.eup %484  ;;  %v216_v38 = vmul.f32 0.5, %v215_v29  ;;  %v84_v50 = vld [vmem:[#allocation3 + $0x5] sm:$0x1]  ;;  %v277_v56 = vsel %vm276_vm12, %v643_v47, 0.0 }
  0x31   :  { %v132_v61 = vadd.f32 %v473_v36, %v131_v52  ;;  %v487_v34 = vpop.eup %486  ;;  %v241_v42 = vmul.f32 0.5, %v240_v32  ;;  %v94_v52 = vld [vmem:[#allocation3 + $0xa] sm:$0x1]  ;;  %vm297_vm3 = vcmp.eq.s32.totalorder %v712_v39, 3  ;;  %vm304_vm6 = vcmp.eq.s32.totalorder %v712_v39, 4 }
  0x32   :  { %v172_v9 = vmul.f32 %v479_v45, %v171_v62  ;;  %v289_v33 = vadd.f32 %v485_v21, %v282_v13  ;;  %v217_v51 = vsub.f32 1.5, %v216_v38 }
  0x33   :  { %v136_v8 = vsel %vm692_vm5, %v473_v36, %v132_v61  ;;  %v242_v53 = vsub.f32 1.5, %v241_v42  ;;  %vm247_vm5 = vcmp.eq.f32.partialorder %v607_v3, 0.0 }
  0x34   :  { %v141_v23 = vsel %vm688_vm4, %v140_v58, %v136_v8  ;;  %v173_v28 = vadd.f32 %v479_v45, %v172_v9  ;;  %v296_v44 = vadd.f32 %v487_v34, %v289_v33  ;;  %v218_v55 = vmul.f32 %v682_v41, %v217_v51 }
  0x35   :  { %v142_v25 = vmul.f32 %v141_v23, %v656_v17  ;;  %v578_v58 = vmov 0.0   ;;  %vm245_vm4 = vcmp.eq.f32.partialorder %v607_v3, inf }
  0x36   :  { %v177_v31 = vsel %vm176_vm9, %v479_v45, %v173_v28  ;;  %v489_v45 = vpop.eup %488  ;;  %v743_v59 = vsel %vm53_vm14, 1.0, %v578_v58  ;;  %v447_v60 = vsel %vm56_vm15, 1.0, %v578_v58  ;;  %v219_v41 = vmul.f32 %v218_v55, %v605_v2 }
  0x37   :  { %v182_v36 = vsel %vm179_vm10, %v181_v22, %v177_v31  ;;  %v143_v35 = vsel %vm126_vm0, %v142_v25, %v656_v17  ;;  %v303_v54 = vadd.f32 %v489_v45, %v296_v44  ;;  %vm290_vm0 = vcmp.eq.s32.totalorder %v712_v39, 2 }
  0x38   :  { %v183_v37 = vmul.f32 %v182_v36, %v664_v27  ;;  %v291_v47 = vsel %vm290_vm0, %v647_v57, 0.0  ;;  %v298_v28 = vsel %vm297_vm3, %v651_v5, 0.0  ;;  %v305_v36 = vsel %vm304_vm6, %v654_v16, 0.0 }
  0x3a   :  { %v184_v40 = vsel %vm167_vm1, %v183_v37, %v664_v27  ;;  %vm220_vm1 = vcmp.eq.f32.partialorder %v605_v2, inf }
  0x3b   :  { %vm717_vm11 = vcmp.ge.f32.partialorder %v143_v35, %v184_v40  ;;  %v186_v4 = vmax.f32 %v143_v35, %v184_v40  ;;  %v221_v22 = vsel %vm220_vm1, %v605_v2, %v219_v41  ;;  %v316_v35 = vlaneseq }
  0x3c   :  { %v725_v17 = vsel %vm717_vm11, %v617_v14, %v627_v20  ;;  %v731_v27 = vsel %vm717_vm11, %v619_v15, %v631_v24  ;;  %v195_v14 = vmul.f32 %v84_v50, %v84_v50  ;;  %v196_v20 = vmul.f32 %v94_v52, %v94_v52 }
  0x3d   :  { %490 = vrsqrt.f32 %v725_v17  ;;  %v284_v15 = vsel %vm283_vm13, %v645_v48, 0.0  ;;  %v243_v24 = vmul.f32 %v684_v43, %v242_v53  ;;  %v187_v6 = vsel %vm717_vm11, %v84_v50, %v94_v52 }
  0x3e   :  { %492 = vrsqrt.f32 %v731_v27  ;;  %v285_v61 = vadd.f32 %v284_v15, %v277_v56  ;;  %v197_v63 = vadd.f32 %v196_v20, %v195_v14  ;;  %v188_v57 = vsel %vm717_vm11, %v613_v11, %v623_v18 }
  0x3f   :  { %494 = vlog2.f32 %v303_v54  ;;  %v244_v9 = vmul.f32 %v243_v24, %v607_v3  ;;  %v189_v23 = vsel %vm717_vm11, %v615_v12, %v625_v19  ;;  %v192_v29 = vsub.f32 %v187_v6, %v186_v4 }
  0x40   :  { %v292_v13 = vadd.f32 %v291_v47, %v285_v61  ;;  %v199_v11 = vsub.f32 %v188_v57, %v601_v0  ;;  %v248_v12 = vand.u32 2147483648, %v607_v3  ;;  %v200_v19 = vsub.f32 %v189_v23, %v603_v1 }
  0x41   :  { %v246_v31 = vsel %vm245_vm4, %v607_v3, %v244_v9  ;;  %vm208_vm7 = vcmp.eq.f32.partialorder %v725_v17, inf  ;;  %v193_v37 = vmul.f32 %v192_v29, %v192_v29  ;;  %vm210_vm8 = vcmp.eq.f32.partialorder %v725_v17, 0.0 }
  0x42   :  { %v299_v33 = vadd.f32 %v298_v28, %v292_v13  ;;  %v211_v0 = vand.u32 2147483648, %v725_v17  ;;  %vm233_vm9 = vcmp.eq.f32.partialorder %v731_v27, inf  ;;  %v236_v1 = vand.u32 2147483648, %v731_v27 }
  0x43   :  { %v491_v62 = vpop.eup %490  ;;  %v251_v40 = vmul.f32 %v199_v11, %v199_v11  ;;  %v252_v44 = vmul.f32 %v200_v19, %v200_v19  ;;  %v224_v16 = vsel %vm222_vm2, %v223_v7, %v221_v22  ;;  %vm235_vm10 = vcmp.eq.f32.partialorder %v731_v27, 0.0 }
  0x44   :  { %v493_v48 = vpop.eup %492  ;;  %v202_v43 = vmul.f32 %v491_v62, %v725_v17  ;;  %v306_v45 = vadd.f32 %v305_v36, %v299_v33  ;;  %v194_v50 = vmul.f32 %v743_v59, %v193_v37  ;;  %v198_v51 = vmul.f32 %v447_v60, %v197_v63 }
  0x45   :  { %v227_v8 = vmul.f32 %v493_v48, %v731_v27  ;;  %v495_v21 = vpop.eup %494  ;;  %v249_v53 = vsel %vm247_vm5, %v248_v12, %v246_v31  ;;  %v317_v54 = vshrl.u32 %v316_v35, 7  ;;  %v253_v55 = vadd.f32 %v252_v44, %v251_v40 }
  0x46   :  { %v203_v10 = vmul.f32 %v491_v62, %v202_v43  ;;  %v308_v34 = vmul.f32 0.6931472, %v495_v21  ;;  %v321_v60 = vperm.slane %v194_v50, 0  ;;  %v326_v61 = vperm.slane %v198_v51, 0 }
  0x47   :  { %v228_v25 = vmul.f32 %v493_v48, %v227_v8  ;;  %vm319_vm11 = vcmp.eq.s32.totalorder %v317_v54, 0  ;;  %vm324_vm12 = vcmp.eq.s32.totalorder %v317_v54, 1  ;;  %vm330_vm13 = vcmp.eq.s32.totalorder %v317_v54, 2 }
  0x48   :  { %v204_v30 = vmul.f32 0.5, %v203_v10  ;;  %v309_v46 = vadd.f32 %v308_v34, %v662_v26  ;;  %v323_v41 = vsel %vm319_vm11, %v321_v60, 0.0  ;;  %vm336_vm14 = vcmp.eq.s32.totalorder %v317_v54, 3 }
  0x49   :  { %v229_v18 = vmul.f32 0.5, %v228_v25 }
  0x4a   :  { %v205_v32 = vsub.f32 1.5, %v204_v30  ;;  %v310_v56 = vsub.f32 %v309_v46, %v306_v45 }
  0x4b   :  { %v230_v5 = vsub.f32 1.5, %v229_v18 }
  0x4c   :  { %v206_v38 = vmul.f32 %v491_v62, %v205_v32  ;;  %v311_v63 = vmul.f32 %v743_v59, %v310_v56 }
  0x4d   :  { %v231_v39 = vmul.f32 %v493_v48, %v230_v5 }
  0x4e   :  { %v207_v42 = vmul.f32 %v206_v38, %v725_v17  ;;  %v338_v48 = vperm.slane %v311_v63, 0 }
  0x4f   :  { %v232_v49 = vmul.f32 %v231_v39, %v731_v27 }
  0x50   :  { %v209_v52 = vsel %vm208_vm7, %v725_v17, %v207_v42  ;;  %v340_v7 = vsel %vm336_vm14, %v338_v48, 0.0 }
  0x51   :  { %v212_v26 = vsel %vm210_vm8, %v211_v0, %v209_v52  ;;  %v234_v2 = vsel %vm233_vm9, %v731_v27, %v232_v49  ;;  %v328_v27 = vsel %vm324_vm12, %v326_v61, 0.0  ;;  %v397_v49 = vand.u32 127, %v316_v35 }
  0x52   :  { %v225_v14 = vsub.f32 %v212_v26, %v224_v16  ;;  %v237_v20 = vsel %vm235_vm10, %v236_v1, %v234_v2  ;;  %v329_v4 = vadd.f32 %v328_v27, %v323_v41 }
  0x53   :  { %v250_v15 = vsub.f32 %v237_v20, %v249_v53  ;;  %vm403_vm15 = vcmp.eq.s32.totalorder %v397_v49, 1  ;;  %vm398_vm0 = vcmp.eq.s32.totalorder %v397_v49, 0  ;;  %vm409_vm1 = vcmp.eq.s32.totalorder %v397_v49, 2 }
  0x54   :  { %v254_v24 = vmul.f32 %v225_v14, %v225_v14  ;;  %v449_v50 = vsel %vm403_vm15, 1.0, %v578_v58  ;;  %v448_v52 = vsel %vm398_vm0, 1.0, %v578_v58  ;;  %vm415_vm2 = vcmp.eq.s32.totalorder %v397_v49, 3 }
  0x55   :  { %v256_v62 = vmul.f32 %v250_v15, %v250_v15  ;;  %v450_v35 = vsel %vm409_vm1, 1.0, %v578_v58  ;;  %vm421_vm3 = vcmp.eq.s32.totalorder %v397_v49, 4  ;;  %v451_v14 = vsel %vm415_vm2, 1.0, %v578_v58 }
  0x56   :  { %v255_v3 = vadd.f32 %v254_v24, %v253_v55  ;;  %v452_v15 = vsel %vm421_vm3, 1.0, %v578_v58 }
  0x58   :  { %v257_v17 = vadd.f32 %v256_v62, %v255_v3 }
  0x5a   :  { %v258_v47 = vmul.f32 %v743_v59, %v257_v17 }
  0x5c   :  { %v332_v43 = vperm.slane %v258_v47, 0 }
  0x5e   :  { %v334_v6 = vsel %vm330_vm13, %v332_v43, 0.0 }
  0x5f   :  { %v335_v8 = vadd.f32 %v334_v6, %v329_v4 }
  0x61   :  { %v341_v9 = vadd.f32 %v340_v7, %v335_v8 }
  0x63   :  { %v370_v57 = vsel %vm330_vm13, %v341_v9, 0.0  ;;  %v348_v10 = vsel %vm319_vm11, %v341_v9, 0.0  ;;  %v381_v13 = vsel %vm336_vm14, %v341_v9, 0.0  ;;  %v359_v21 = vsel %vm324_vm12, %v341_v9, 0.0 }
  0x64   :  { %371 = vadd.xlane.f32.xlu1 %v370_v57  ;;  %349 = vadd.xlane.f32.xlu0 %v348_v10 }
  0x6c   :  { %382 = vadd.xlane.f32.xlu1 %v381_v13  ;;  %360 = vadd.xlane.f32.xlu0 %v359_v21 }
  0xd7   :  { %v372_v59 = vpop.xlane.xlu1 %371  ;;  %v350_v23 = vpop.xlane.xlu0 %349 }
  0xd8   :  { %v373_v22 = vrot.slane %v372_v59, 4  ;;  %v351_v25 = vrot.slane %v350_v23, 4 }
  0xda   :  { %v352_v28 = vadd.f32 %v351_v25, %v350_v23  ;;  %v374_v29 = vadd.f32 %v373_v22, %v372_v59 }
  0xdc   :  { %v353_v30 = vrot.slane %v352_v28, 2  ;;  %v375_v18 = vrot.slane %v374_v29, 2 }
  0xde   :  { %v354_v11 = vadd.f32 %v353_v30, %v352_v28  ;;  %v376_v37 = vadd.f32 %v375_v18, %v374_v29 }
  0xdf   :  { %v383_v31 = vpop.xlane.xlu1 %382  ;;  %v361_v12 = vpop.xlane.xlu0 %360 }
  0xe0   :  { %v384_v19 = vrot.slane %v383_v31, 4  ;;  %v362_v32 = vrot.slane %v361_v12, 4  ;;  %v355_v33 = vrot.slane %v354_v11, 1  ;;  %v377_v40 = vrot.slane %v376_v37, 1 }
  0xe2   :  { %v385_v34 = vadd.f32 %v384_v19, %v383_v31  ;;  %v363_v5 = vadd.f32 %v362_v32, %v361_v12  ;;  %v356_v36 = vadd.f32 %v355_v33, %v354_v11  ;;  %v378_v16 = vadd.f32 %v377_v40, %v376_v37 }
  0xe4   :  { %v386_v38 = vrot.slane %v385_v34, 2  ;;  %v364_v0 = vrot.slane %v363_v5, 2  ;;  %458 = vpush %v356_v36 }
  0xe6   :  { %v387_v39 = vadd.f32 %v386_v38, %v385_v34  ;;  %v365_v1 = vadd.f32 %v364_v0, %v363_v5 }
  0xe8   :  { %v366_v42 = vrot.slane %v365_v1, 1  ;;  %v388_v44 = vrot.slane %v387_v39, 1 }
  0xea   :  { %v367_v45 = vadd.f32 %v366_v42, %v365_v1  ;;  %v389_v46 = vadd.f32 %v388_v44, %v387_v39 }
  0xec   :  { %460 = vpush %v367_v45 }
  0xed   :  { %462 = vpush %v378_v16 }
  0xee   :  { %464 = vpush %v389_v46 }
 0x115   :  { %s459_s0 = spop %458 }
 0x116   :  { %s358_s1 = smul.f32 0.5, %s459_s0 }
 0x118   :  { %v406_v51 = vstv %s358_s1 }
 0x119   :  { %v407_v2 = vmul.f32 %v449_v50, %v406_v51 }
 0x11d   :  { %s461_s21 = spop %460 }
 0x11e   :  { %s369_s22 = smul.f32 0.5, %s461_s21  ;;  %s463_s23 = spop %462 }
 0x11f   :  { %s380_s24 = smul.f32 0.5, %s463_s23  ;;  %s465_s26 = spop %464 }
 0x120   :  { %s392_s25 = sadd.f32 %s369_s22, %s358_s1  ;;  %s391_s28 = smul.f32 0.5, %s465_s26  ;;  %v412_v53 = vstv %s369_s22 }
 0x121   :  { %s393_s27 = smul.f32 5.0, %s380_s24  ;;  %v418_v20 = vstv %s380_s24  ;;  %v413_v55 = vmul.f32 %v450_v35, %v412_v53 }
 0x122   :  { %v424_v24 = vstv %s391_s28  ;;  %v419_v60 = vmul.f32 %v451_v14, %v418_v20 }
 0x123   :  { %s394_s29 = sadd.f32 %s393_s27, %s392_s25  ;;  %v425_v3 = vmul.f32 %v452_v15, %v424_v24 }
 0x125   :  { %s395_s30 = sadd.f32 %s394_s29, %s391_s28 }
 0x127   :  { %v401_v26 = vstv %s395_s30 }
 0x128   :  { %v402_v54 = vmul.f32 %v448_v52, %v401_v26 }
 0x12a   :  { %v408_v56 = vadd.f32 %v407_v2, %v402_v54 }
 0x12c   :  { %v414_v61 = vadd.f32 %v413_v55, %v408_v56 }
 0x12e   :  { %v420_v62 = vadd.f32 %v419_v60, %v414_v61 }
 0x130   :  { %v426_v63 = vadd.f32 %v425_v3, %v420_v62 }
 0x132   :  { %427 = vst [vmem:[#allocation8] sm:$0xff] %v426_v63 }
 0x133   :  { %438 = dma.vmem_to_hbm [thread:$0]  %s434_s4, 128, %s436_s7, [#allocation5]  }
 0x134   :  { %572 = dma.done.wait [#allocation5], 128  }
 0x135   :  { %573 = vsyncadd [#allocation5], 4294967168 }
 0x136   :  { %443 = vsyncpa [#allocation4], 1 }
 0x137   :  { %444 = vsyncpa [#allocation7], 1 }
 0x138   :  { %445 = vsyncpa [#allocation5], 1 }

</bundles_post_ra>
